<compile_context>
chip_gen: v7x
topology: tpu7x:2x2x1
jax: 0.10.0
libtpu: 0.0.40
codegen_flags: <defaults>
</compile_context>

<pallas_src>
import functools

import jax
import jax.numpy as jnp
from jax.experimental import pallas as pl
from jax.experimental.pallas import tpu as pltpu


# -----------------------------------------------------------------------------
# Pallas kernel: channels-on-sublane / pixels-on-lane pointwise denoiser.
# -----------------------------------------------------------------------------
def _denoiser_kernel(x_ref, bias1_ref, w1t_ref, w2t_ref, b2_ref, o_ref):
    # x_ref:     (C, T)   bf16   pixel tile (T lanes), channels on sublanes
    # bias1_ref: (CH, 1)  f32    b1 + time embedding (folded in wrapper)
    # w1t_ref:   (CH, C)  bf16   W1^T, resident across grid steps
    # w2t_ref:   (C, CH)  bf16   W2^T, resident across grid steps
    # b2_ref:    (C, 1)   f32
    # o_ref:     (C, T)   f32    lane-dense output (T is a multiple of 128)
    h = jnp.dot(w1t_ref[...], x_ref[...],
                preferred_element_type=jnp.float32)           # (CH, T), MXU
    h = h + bias1_ref[...]                                    # per-channel bias+temb
    h = h * jax.nn.sigmoid(h)                                 # SiLU in f32 (EUP)
    out = jnp.dot(w2t_ref[...], h.astype(jnp.bfloat16),
                  preferred_element_type=jnp.float32)         # (C, T), MXU
    o_ref[...] = (out + b2_ref[...]).astype(o_ref.dtype)


def _pick_tile(hw, cap=4096):
    """Largest lane tile: full HW if small, else the biggest multiple-of-128
    divisor of HW that fits the cap (keeps double-buffered VMEM modest even on
    v7x's 64 MiB)."""
    if hw <= cap:
        return hw
    for t in range(cap - cap % 128, 127, -128):
        if hw % t == 0:
            return t
    # TODO(synk): pad HW to a multiple of 128 for ragged spatial sizes.
    return hw


def _denoiser_pallas(x_flat, bias1, w1t, w2t, b2, *, tile):
    """x_flat: (B, C, HW) bf16; bias1: (B, CH, 1) f32; returns (B, C, HW) f32."""
    B, C, HW = x_flat.shape
    CH = w1t.shape[0]
    assert HW % tile == 0

    grid = (B, HW // tile)
    return pl.pallas_call(
        _denoiser_kernel,
        out_shape=jax.ShapeDtypeStruct((B, C, HW), jnp.float32),
        grid_spec=pltpu.PrefetchScalarGridSpec(
            num_scalar_prefetch=0,
            grid=grid,
            in_specs=[
                pl.BlockSpec((None, C, tile), lambda b, p: (b, 0, p)),  # x
                pl.BlockSpec((None, CH, 1), lambda b, p: (b, 0, 0)),    # b1 + temb
                pl.BlockSpec((CH, C), lambda b, p: (0, 0)),             # W1^T (resident)
                pl.BlockSpec((C, CH), lambda b, p: (0, 0)),             # W2^T (resident)
                pl.BlockSpec((C, 1), lambda b, p: (0, 0)),              # b2
            ],
            out_specs=pl.BlockSpec((None, C, tile), lambda b, p: (b, 0, p)),
        ),
        compiler_params=pltpu.CompilerParams(
            dimension_semantics=("parallel", "parallel")
        ),
    )(x_flat, bias1, w1t, w2t, b2)


# -----------------------------------------------------------------------------
# Inner "model": time-conditioned pointwise denoiser.
# -----------------------------------------------------------------------------
def _sinusoidal_embed(t, emb_dim):
    # t: (B,) float32 -> (B, emb_dim); emb_dim must be even.
    assert emb_dim % 2 == 0
    half = emb_dim // 2
    freqs = jnp.exp(
        -jnp.log(10000.0) * jnp.arange(half, dtype=jnp.float32) / half
    )
    args = t[:, None] * freqs[None, :]
    return jnp.concatenate([jnp.sin(args), jnp.cos(args)], axis=-1)


def make_params(key, c_in, c_hidden, emb_dim):
    ks = jax.random.split(key, 6)
    scale = 0.1
    return dict(
        # time MLP (glue, tiny)
        wt1=scale * jax.random.normal(ks[0], (emb_dim, c_hidden), jnp.float32),
        bt1=jnp.zeros((c_hidden,), jnp.float32),
        wt2=scale * jax.random.normal(ks[1], (c_hidden, c_hidden), jnp.float32),
        bt2=jnp.zeros((c_hidden,), jnp.float32),
        # pointwise conv weights (hot path, Pallas)
        w1=scale * jax.random.normal(ks[2], (c_in, c_hidden), jnp.float32),
        b1=jnp.zeros((c_hidden,), jnp.float32),
        w2=scale * jax.random.normal(ks[3], (c_hidden, c_in), jnp.float32),
        b2=jnp.zeros((c_in,), jnp.float32),
    )


@functools.partial(jax.jit, static_argnames=("emb_dim",))
def diffusion_forward(params, x_nchw, t, *, emb_dim=32):
    """DiffusionModel.forward(x_t, t) = model(x_t, t).

    x_nchw: (B, C, H, W) float32 (PyTorch convention), t: (B,) float32.
    Returns (B, C, H, W) float32.
    """
    B, C, H, W = x_nchw.shape
    HW = H * W
    tile = _pick_tile(HW)

    # Time embedding MLP (small; plain JAX glue).
    emb = _sinusoidal_embed(t, emb_dim)                      # (B, E)
    temb = emb @ params["wt1"] + params["bt1"]
    temb = temb * jax.nn.sigmoid(temb)                       # SiLU
    temb = temb @ params["wt2"] + params["bt2"]              # (B, CH)

    # Fold temb into the first bias: one fewer DMA stream into the kernel.
    bias1 = (temb + params["b1"][None, :])[:, :, None]       # (B, CH, 1) f32
    b2 = params["b2"][:, None]                               # (C, 1) f32

    # Weights as LHS (transposed), bf16 matmul operands, f32 accumulation.
    w1t = params["w1"].T.astype(jnp.bfloat16)                # (CH, C)
    w2t = params["w2"].T.astype(jnp.bfloat16)                # (C, CH)

    # Stay NCHW: flatten spatial dims onto the lane axis (no HBM transpose).
    x_flat = x_nchw.reshape(B, C, HW).astype(jnp.bfloat16)   # (B, C, HW)

    out_flat = _denoiser_pallas(x_flat, bias1, w1t, w2t, b2, tile=tile)
    return out_flat.reshape(B, C, H, W)                      # already NCHW


# Pure-JAX f32 reference for sanity checking.
def _reference_forward(params, x_nchw, t, emb_dim=32):
    B, C, H, W = x_nchw.shape
    emb = _sinusoidal_embed(t, emb_dim)
    temb = emb @ params["wt1"] + params["bt1"]
    temb = temb * jax.nn.sigmoid(temb)
    temb = temb @ params["wt2"] + params["bt2"]
    x_flat = jnp.transpose(x_nchw, (0, 2, 3, 1)).reshape(B, H * W, C)
    h = x_flat @ params["w1"] + params["b1"] + temb[:, None, :]
    h = h * jax.nn.sigmoid(h)
    out = h @ params["w2"] + params["b2"]
    return jnp.transpose(out.reshape(B, H, W, C), (0, 3, 1, 2))


if __name__ == "__main__":
    key = jax.random.PRNGKey(0)
    k_param, k_x, k_t = jax.random.split(key, 3)

    B, C, H, W = 2, 4, 16, 16
    C_HIDDEN, EMB_DIM = 32, 32

    params = make_params(k_param, C, C_HIDDEN, EMB_DIM)
    x_t = jax.random.normal(k_x, (B, C, H, W), jnp.float32)
    # diffusion timesteps (float, as in DiffusionModel.generate)
    t = jax.random.uniform(k_t, (B,), jnp.float32, 0.0, 1000.0)

    out = diffusion_forward(params, x_t, t, emb_dim=EMB_DIM)
    out = jax.block_until_ready(out)

    ref = _reference_forward(params, x_t, t, emb_dim=EMB_DIM)
    assert out.shape == (B, C, H, W)
    # bf16 matmul operands (f32 accumulate) -> compare against f32 reference
    # with a tolerance that comfortably covers bf16 rounding at these scales.
    max_err = float(jnp.max(jnp.abs(out - ref)))
    assert jnp.allclose(out, ref, atol=1e-2, rtol=1e-2), max_err

    print("KERNEL_OK")
</pallas_src>

<mosaic_0001>
module attributes {stable_mosaic.version = 11 : i64} {
  func.func @_denoiser_kernel(%arg0: i32, %arg1: i32, %arg2: memref<1x4x256xbf16, #tpu.memory_space<vmem>>, %arg3: memref<1x32x1xf32, #tpu.memory_space<vmem>>, %arg4: memref<32x4xbf16, #tpu.memory_space<vmem>>, %arg5: memref<4x32xbf16, #tpu.memory_space<vmem>>, %arg6: memref<4x1xf32, #tpu.memory_space<vmem>>, %arg7: memref<1x4x256xf32, #tpu.memory_space<vmem>>) attributes {dimension_semantics = [#tpu.dimension_semantics<parallel>, #tpu.dimension_semantics<parallel>], iteration_bounds = array<i64: 2, 1>, scalar_prefetch = 0 : i64, scratch_operands = 0 : i64, tpu.core_type = #tpu.core_type<tc>, window_params = [{transform_indices = @transform_0, window_bounds = array<i64: 1, 4, 256>}, {transform_indices = @transform_1, window_bounds = array<i64: 1, 32, 1>}, {pipeline_mode = #tpu.pipeline_mode<synchronous>, transform_indices = @transform_2, window_bounds = array<i64: 32, 4>}, {pipeline_mode = #tpu.pipeline_mode<synchronous>, transform_indices = @transform_3, window_bounds = array<i64: 4, 32>}, {pipeline_mode = #tpu.pipeline_mode<synchronous>, transform_indices = @transform_4, window_bounds = array<i64: 4, 1>}, {transform_indices = @transform_5, window_bounds = array<i64: 1, 4, 256>}]} {
    %c0 = arith.constant 0 : index
    %c0_0 = arith.constant 0 : index
    %0 = vector.load %arg4[%c0, %c0_0] : memref<32x4xbf16, #tpu.memory_space<vmem>>, vector<32x4xbf16>
    %c0_1 = arith.constant 0 : index
    %c0_2 = arith.constant 0 : index
    %c0_3 = arith.constant 0 : index
    %1 = vector.load %arg2[%c0_1, %c0_2, %c0_3] : memref<1x4x256xbf16, #tpu.memory_space<vmem>>, vector<1x4x256xbf16>
    %2 = vector.shape_cast %1 : vector<1x4x256xbf16> to vector<4x256xbf16>
    %cst = arith.constant dense<0.000000e+00> : vector<32x256xf32>
    %3 = tpu.matmul %0, %2, %cst {dimension_numbers = #tpu.dot_dimension_numbers<[1], [0], [0], [1], [0, 0, 1, 1], [], []>} : vector<32x4xbf16>, vector<4x256xbf16>, vector<32x256xf32> -> vector<32x256xf32>
    %c0_4 = arith.constant 0 : index
    %c0_5 = arith.constant 0 : index
    %c0_6 = arith.constant 0 : index
    %4 = vector.load %arg3[%c0_4, %c0_5, %c0_6] : memref<1x32x1xf32, #tpu.memory_space<vmem>>, vector<1x32x1xf32>
    %5 = vector.shape_cast %4 : vector<1x32x1xf32> to vector<32x1xf32>
    %6 = vector.broadcast %5 : vector<32x1xf32> to vector<32x256xf32>
    %7 = arith.addf %3, %6 : vector<32x256xf32>
    %8 = arith.negf %7 : vector<32x256xf32>
    %9 = math.exp %8 : vector<32x256xf32>
    %cst_7 = arith.constant 1.000000e+00 : f32
    %10 = vector.broadcast %cst_7 : f32 to vector<32x256xf32>
    %11 = arith.addf %10, %9 : vector<32x256xf32>
    %12 = arith.divf %10, %11 : vector<32x256xf32>
    %13 = arith.mulf %7, %12 : vector<32x256xf32>
    %c0_8 = arith.constant 0 : index
    %c0_9 = arith.constant 0 : index
    %14 = vector.load %arg5[%c0_8, %c0_9] : memref<4x32xbf16, #tpu.memory_space<vmem>>, vector<4x32xbf16>
    %15 = arith.truncf %13 : vector<32x256xf32> to vector<32x256xbf16>
    %cst_10 = arith.constant dense<0.000000e+00> : vector<4x256xf32>
    %16 = tpu.matmul %14, %15, %cst_10 {dimension_numbers = #tpu.dot_dimension_numbers<[1], [0], [0], [1], [0, 0, 1, 1], [], []>} : vector<4x32xbf16>, vector<32x256xbf16>, vector<4x256xf32> -> vector<4x256xf32>
    %c0_11 = arith.constant 0 : index
    %c0_12 = arith.constant 0 : index
    %17 = vector.load %arg6[%c0_11, %c0_12] : memref<4x1xf32, #tpu.memory_space<vmem>>, vector<4x1xf32>
    %18 = vector.broadcast %17 : vector<4x1xf32> to vector<4x256xf32>
    %19 = arith.addf %16, %18 : vector<4x256xf32>
    %c0_13 = arith.constant 0 : index
    %c0_14 = arith.constant 0 : index
    %c0_15 = arith.constant 0 : index
    %20 = vector.load %arg7[%c0_13, %c0_14, %c0_15] : memref<1x4x256xf32, #tpu.memory_space<vmem>>, vector<1x4x256xf32>
    %21 = vector.shape_cast %20 : vector<1x4x256xf32> to vector<4x256xf32>
    %22 = vector.shape_cast %19 : vector<4x256xf32> to vector<1x4x256xf32>
    tpu.vector_store %arg7[%c0_13, %c0_14, %c0_15], %22 {strides = array<i32>} : memref<1x4x256xf32, #tpu.memory_space<vmem>>, vector<1x4x256xf32>,
    return
  }
  func.func @transform_0(%arg0: i32, %arg1: i32) -> (i32, i32, i32) {
    %c0_i32 = arith.constant 0 : i32
    %c0_i32_0 = arith.constant 0 : i32
    return %arg0, %c0_i32, %arg1 : i32, i32, i32
  }
  func.func @transform_1(%arg0: i32, %arg1: i32) -> (i32, i32, i32) {
    %c0_i32 = arith.constant 0 : i32
    %c0_i32_0 = arith.constant 0 : i32
    %c0_i32_1 = arith.constant 0 : i32
    return %arg0, %c0_i32, %c0_i32_0 : i32, i32, i32
  }
  func.func @transform_2(%arg0: i32, %arg1: i32) -> (i32, i32) {
    %c0_i32 = arith.constant 0 : i32
    %c0_i32_0 = arith.constant 0 : i32
    %c0_i32_1 = arith.constant 0 : i32
    return %c0_i32, %c0_i32_0 : i32, i32
  }
  func.func @transform_3(%arg0: i32, %arg1: i32) -> (i32, i32) {
    %c0_i32 = arith.constant 0 : i32
    %c0_i32_0 = arith.constant 0 : i32
    %c0_i32_1 = arith.constant 0 : i32
    return %c0_i32, %c0_i32_0 : i32, i32
  }
  func.func @transform_4(%arg0: i32, %arg1: i32) -> (i32, i32) {
    %c0_i32 = arith.constant 0 : i32
    %c0_i32_0 = arith.constant 0 : i32
    %c0_i32_1 = arith.constant 0 : i32
    return %c0_i32, %c0_i32_0 : i32, i32
  }
  func.func @transform_5(%arg0: i32, %arg1: i32) -> (i32, i32, i32) {
    %c0_i32 = arith.constant 0 : i32
    %c0_i32_0 = arith.constant 0 : i32
    return %arg0, %c0_i32, %arg1 : i32, i32, i32
  }
}

</mosaic_0001>

<bundles_post_ra>
// kernel: diffusion_forward.1
= control target key start
LH: loop header
LB: loop body
LE: loop exit
PB: predicated region body
PF: predicated region fallthrough
CT: control target
= control target key end

     0   :  { %s763_s18 = smov 0   ;;  %s765_s19 = smov 0   ;;  %s816_s0 = inlined_call_operand.vmem [shape: bf16[2,4,256], index: 0, kind: input, shape index: {}]   ;;  %s817_s1 = inlined_call_operand.vmem [shape: f32[2,32,1], index: 1, kind: input, shape index: {}]   ;;  %s818_s2 = inlined_call_operand.vmem [shape: bf16[32,4], index: 2, kind: input, shape index: {}]   ;;  %s819_s3 = inlined_call_operand.vmem [shape: bf16[4,32], index: 3, kind: input, shape index: {}]   ;;  %s820_s4 = inlined_call_operand.vmem [shape: f32[4,1], index: 4, kind: input, shape index: {}]   ;;  %s821_s5 = inlined_call_operand.vmem [shape: f32[2,4,256], index: 5, kind: output, shape index: {}]  }
   0x1   :  { %s767_s20 = smov 0  }
   0x2 LB: > { %s27_s21 = sadd.s32 1, %s726_s19  ;;  %p620_p0 = scmp.ge.s32.totalorder %s730_s20, 1  ;;  %s730_s20 = sphi %s767_s20, %s15_s20   ;;  %s726_s19 = sphi %s765_s19, %s823_s19   ;;  %s722_s18 = sphi %s763_s18, %s822_s18  }
   0x3   : > { %p29_p1 = scmp.ge.s32.totalorder %s27_s21, 2  ;;  %p218_p2 = scmp.lt.s32.totalorder %s730_s20, 3 }
   0x5   : > { %s825_s21 = smov (%p29_p1, %s27_s21), 0  ;;  %p219_p3 = pnand %p620_p0, %p218_p2 }
   0x6   : > { %p260_p4 = scmp.lt.s32.totalorder (!%p219_p3), %s722_s18, 1  ;;  %v732_v0 = vmov (!%p219_p3), 0   ;;  %vm340_vm0 = vcmask (!%p219_p3), 1041408   ;;  %v674_v7 = vld [vmem:[%s818_s2] sm:$0xff] (!%p219_p3)   ;;  %vm333_vm1 = vcmask (!%p219_p3), 31744   ;;  %v675_v10 = vld [vmem:[%s818_s2 + $0x8] sm:$0xff] (!%p219_p3)  }
   0x7   : > { %222 = sbr.rel (%p219_p3) target bundleno = 501 (0x1f5), region = 40  ;;  %379 = vmatprep.mubr.bf16.mxu0 (!%p219_p3), %v732_v0  ;;  %672 = vset.pattern.permute.xlu0 (!%p219_p3), %v732_v0  ;;  %v461_v9 = vld [vmem:[%s820_s4] sm:$0xf] (!%p219_p3)  ;;  %vm467_vm2 = vcmask (!%p219_p3), 261120  }
   0x8   : > { %673 = vset.pattern.permute.xlu1 (!%p219_p3), %v732_v0  ;;  %503 = vmatprep.mubr.bf16.mxu1 (!%p219_p3), %v732_v0 }
   0xe   : > { %s827_s18 = smov (!%p260_p4, %s722_s18), 1 }
   0xf   : > { %s644_s22 = sshll.u32 %s827_s18, 2  ;;  %s645_s23 = sshll.u32 %s827_s18, 5 }
  0x10   : > { %s267_s26 = scalar_lea.vmem %s816_s0, %s644_s22  ;;  %s273_s29 = scalar_lea.vmem %s817_s1, %s645_s23 }
  0x11   : > { %v629_v1 = vld.sshfl [vmem:[%s267_s26] sm:$0x33 pattern:$0x76325410]  ;;  %v292_v5 = vld [vmem:[%s273_s29 + $0x10] sm:$0xff]  ;;  %v291_v6 = vld [vmem:[%s273_s29 + $0x8] sm:$0xff] }
  0x12   : > { %v290_v2 = vld [vmem:[%s273_s29] sm:$0xff]  ;;  %v332_v3 = vcombine.high %v629_v1, %v629_v1  ;;  %v342_v4 = vsel %vm340_vm0, %v629_v1, 0  ;;  %306 = vperm.xlu1 %673, %v292_v5   ;;  %v293_v8 = vld [vmem:[%s273_s29 + $0x18] sm:$0xff]  ;;  %s646_s13 = sshll.u32 %s827_s18, 3 }
  0x13   : > { %296 = vperm.xlu0 %672, %v290_v2   ;;  %s282_s16 = scalar_lea.vmem %s821_s5, %s646_s13 }
  0x14   : > { %630 = vmatprep.subr.msk.bf16.mxu0 %vm340_vm0, %v332_v3 }
  0x15   : > { %348 = vmatpush1.bf16.msra.mxu0 %v342_v4 }
  0x16   : > { %311 = vperm.xlu1 %673, %v293_v8  }
  0x17   : > { %301 = vperm.xlu0 %672, %v291_v6  }
  0x18   : > { %631 = vmatmul.mubr.msk.bf16.vlgmr.msra.gmra.mrb[0].mxu0 %vm333_vm1, %v674_v7 }
  0x19   : > { %389 = vmatprep.mubr.bf16.mxu0 %v732_v0 }
  0x1b   : > { %464 = vperm.xlu0 %672, %v461_v9  }
  0x20   : > { %632 = vmatmul.mubr.msk.bf16.gmra.mrb[4].mxu0 %vm333_vm1, %v675_v10 }
  0x91   : > { %v307_v22 = vpop.permute.xlu1 %306 }
  0x92   : > { %v297_v11 = vpop.permute.xlu0 %296 }
  0x95   : > { %v312_v29 = vpop.permute.xlu1 %311 }
  0x96   : > { %v302_v15 = vpop.permute.xlu0 %301 }
  0xeb   : > { %v381_v12 = vpop.f32.mrb[0].mxu0 }
  0xec   : > { %v382_v13 = vadd.f32 %v381_v12, %v297_v11  ;;  %v383_v14 = vpop.f32.mrb[1].mxu0  ;;  %v465_v12 = vpop.permute.xlu0 %464 }
  0xed   : > { %v384_v16 = vadd.f32 %v383_v14, %v297_v11  ;;  %v385_v17 = vpop.f32.mrb[2].mxu0  ;;  %v456_v11 = vld [vmem:[%s819_s3] sm:$0x3] }
  0xee   : > { %v633_v18 = vmul.f32 -1.442695, %v382_v13  ;;  %v386_v19 = vadd.f32 %v385_v17, %v302_v15  ;;  %v387_v20 = vpop.f32.mrb[3].mxu0 }
  0xef   : > { %v634_v21 = vmul.f32 -1.442695, %v384_v16  ;;  %v388_v23 = vadd.f32 %v387_v20, %v302_v15 }
  0xf0   : > { %676 = vpow2.f32 %v633_v18  ;;  %v635_v24 = vmul.f32 -1.442695, %v386_v19 }
  0xf1   : > { %678 = vpow2.f32 %v634_v21  ;;  %v636_v25 = vmul.f32 -1.442695, %v388_v23 }
  0xf2   : > { %680 = vpow2.f32 %v635_v24 }
  0xf3   : > { %682 = vpow2.f32 %v636_v25  ;;  %v391_v26 = vpop.f32.mrb[4].mxu0 }
  0xf4   : > { %v392_v27 = vadd.f32 %v391_v26, %v307_v22  ;;  %v393_v28 = vpop.f32.mrb[5].mxu0 }
  0xf5   : > { %v394_v30 = vadd.f32 %v393_v28, %v307_v22  ;;  %v395_v31 = vpop.f32.mrb[6].mxu0 }
  0xf6   : > { %v637_v32 = vmul.f32 -1.442695, %v392_v27  ;;  %v396_v33 = vadd.f32 %v395_v31, %v312_v29  ;;  %v397_v34 = vpop.f32.mrb[7].mxu0 }
  0xf7   : > { %v638_v35 = vmul.f32 -1.442695, %v394_v30  ;;  %v398_v36 = vadd.f32 %v397_v34, %v312_v29 }
  0xf8   : > { %684 = vpow2.f32 %v637_v32  ;;  %v639_v37 = vmul.f32 -1.442695, %v396_v33 }
  0xf9   : > { %686 = vpow2.f32 %v638_v35  ;;  %v640_v38 = vmul.f32 -1.442695, %v398_v36 }
  0xfa   : > { %v677_v39 = vpop.eup %676  ;;  %688 = vpow2.f32 %v639_v37 }
  0xfb   : > { %v679_v40 = vpop.eup %678  ;;  %v424_v41 = vadd.f32 1.0, %v677_v39  ;;  %690 = vpow2.f32 %v640_v38 }
  0xfc   : > { %v681_v42 = vpop.eup %680  ;;  %v425_v43 = vadd.f32 1.0, %v679_v40 }
  0xfd   : > { %v683_v44 = vpop.eup %682  ;;  %692 = vrcp.f32 %v424_v41  ;;  %v426_v45 = vadd.f32 1.0, %v681_v42 }
  0xfe   : > { %694 = vrcp.f32 %v425_v43  ;;  %v427_v46 = vadd.f32 1.0, %v683_v44 }
  0xff   : > { %696 = vrcp.f32 %v426_v45 }
 0x100   : > { %698 = vrcp.f32 %v427_v46 }
 0x102   : > { %v685_v47 = vpop.eup %684 }
 0x103   : > { %v687_v48 = vpop.eup %686  ;;  %v428_v49 = vadd.f32 1.0, %v685_v47 }
 0x104   : > { %v689_v50 = vpop.eup %688  ;;  %v429_v51 = vadd.f32 1.0, %v687_v48 }
 0x105   : > { %v691_v52 = vpop.eup %690  ;;  %700 = vrcp.f32 %v428_v49  ;;  %v430_v53 = vadd.f32 1.0, %v689_v50 }
 0x106   : > { %702 = vrcp.f32 %v429_v51  ;;  %v431_v54 = vadd.f32 1.0, %v691_v52 }
 0x107   : > { %v693_v55 = vpop.eup %692  ;;  %704 = vrcp.f32 %v430_v53 }
 0x108   : > { %v695_v56 = vpop.eup %694  ;;  %706 = vrcp.f32 %v431_v54  ;;  %v448_v59 = vmul.f32 %v693_v55, %v382_v13 }
 0x109   : > { %v697_v57 = vpop.eup %696  ;;  %v449_v61 = vmul.f32 %v695_v56, %v384_v16 }
 0x10a   : > { %v699_v58 = vpop.eup %698  ;;  %v450_v60 = vmul.f32 %v697_v57, %v386_v19 }
 0x10b   : > { %v451_v62 = vmul.f32 %v699_v58, %v388_v23 }
 0x10c   : > { %v457_v63 = vpack.c.bf16 %v450_v60, %v448_v59 }
 0x10d   : > { %v458_v0 = vpack.c.bf16 %v451_v62, %v449_v61 }
 0x10f   : > { %v701_v1 = vpop.eup %700  ;;  %471 = vmatprep.subr.bf16.mxu1 %v458_v0 }
 0x110   : > { %v703_v2 = vpop.eup %702  ;;  %472 = vmatpush1.bf16.msra.mxu1 %v457_v63  ;;  %v452_v5 = vmul.f32 %v701_v1, %v392_v27 }
 0x111   : > { %v705_v3 = vpop.eup %704  ;;  %v453_v7 = vmul.f32 %v703_v2, %v394_v30 }
 0x112   : > { %v707_v4 = vpop.eup %706  ;;  %v454_v6 = vmul.f32 %v705_v3, %v396_v33 }
 0x113   : > { %v455_v8 = vmul.f32 %v707_v4, %v398_v36 }
 0x114   : > { %v459_v9 = vpack.c.bf16 %v454_v6, %v452_v5 }
 0x115   : > { %v460_v10 = vpack.c.bf16 %v455_v8, %v453_v7 }
 0x117   : > { %473 = vmatprep.subr.bf16.mxu1 %v460_v10 }
 0x118   : > { %474 = vmatpush1.bf16.msra.mxu1 %v459_v9 }
 0x11b   : > { %641 = vmatmul.mubr.msk.bf16.vlgmr.msra.gmra.mrb[0].mxu1 %vm467_vm2, %v456_v11 }
 0x1ee   : > { %v505_v13 = vpop.f32.mrb[0].mxu1 }
 0x1ef   : > { %v506_v14 = vadd.f32 %v505_v13, %v465_v12  ;;  %v507_v15 = vpop.f32.mrb[1].mxu1 }
 0x1f0   : > { %v508_v16 = vadd.f32 %v507_v15, %v465_v12  ;;  %v509_v17 = vpop.f32.mrb[2].mxu1 }
 0x1f1   : > { %v510_v18 = vpop.f32.mrb[3].mxu1 }
 0x1f2   : > { %v514_v19 = vcombine.low %v506_v14, %v508_v16 }
 0x1f4   : > { %516 = vst [vmem:[%s282_s16] sm:$0xff] %v514_v19 }
 0x1f5 PF: > { %s15_s20 = sadd.s32 1, %s730_s20   ;;  %s822_s18 = smov %s726_s19 }
 0x1f6   : > { %p12_p5 = scmp.ge.s32.totalorder %s15_s20, 4   ;;  %s823_s19 = smov %s825_s21 }
 0x1f8   :  { %14 = sbr.rel (!%p12_p5) target bundleno = 2 (0x2), region = 73 }

</bundles_post_ra>
